<compile_context>
chip_gen: v5e
topology: v5e:2x2
jax: 0.10.0
libtpu: 0.0.40
codegen_flags: <defaults>
</compile_context>

<pallas_src>
import functools

import jax
import jax.numpy as jnp
from jax import lax
from jax.experimental import pallas as pl
from jax.experimental.pallas import tpu as pltpu


def _round_up(n, m):
    return ((n + m - 1) // m) * m


def _vmem_capacity_bytes():
    try:
        info = pltpu.get_tpu_info()
        return int(getattr(info, "vmem_capacity_bytes", 64 * 1024 * 1024))
    except Exception:
        return 64 * 1024 * 1024  # conservative default (v7x per-TC VMEM)


def _squeeze_to_logits(x):
    """[bsz, C, 1, ...] -> [bsz, C].

    torch.squeeze() drops *all* singleton dims; here we only drop singleton dims
    beyond axis 0 so a batch of 1 does not collapse the batch axis.
    """
    if x.ndim == 2:
        return x
    if x.ndim < 2:
        raise ValueError(f"expected logits of rank >= 2, got {x.shape}")
    keep = [0] + [d for d in range(1, x.ndim) if x.shape[d] != 1]
    if len(keep) != 2:
        raise ValueError(f"cannot squeeze {x.shape} to [bsz, C]")
    return x.reshape(tuple(x.shape[d] for d in keep))


def _nce_softmax_ns_kernel(x_ref, o_ref, *, block_b):
    # x_ref: [TB, C] logits block (VMEM); o_ref: [TB, 1] per-row loss block.
    i = pl.program_id(0)
    x = x_ref[...].astype(jnp.float32)
    tb, c = x.shape

    # numerically stable logsumexp over the class (lane) axis
    m = jnp.max(x, axis=-1, keepdims=True)                 # [TB, 1]
    s = jnp.sum(jnp.exp(x - m), axis=-1, keepdims=True)    # [TB, 1]
    lse = jnp.log(s) + m                                   # [TB, 1]

    # label of global row g is g -> pick this block's diagonal element
    row = lax.broadcasted_iota(jnp.int32, (tb, c), 0) + i * block_b
    col = lax.broadcasted_iota(jnp.int32, (tb, c), 1)
    pos = jnp.sum(jnp.where(col == row, x, 0.0), axis=-1, keepdims=True)

    o_ref[...] = (lse - pos).astype(o_ref.dtype)


def nce_softmax_loss_ns(x):
    """Forward of NCESoftmaxLossNS. Returns the scalar mean InfoNCE loss."""
    x2d = _squeeze_to_logits(x)
    B, C = x2d.shape
    if C < B:
        raise ValueError(f"labels arange({B}) out of range for {C} classes")

    elem = jnp.dtype(x2d.dtype).itemsize
    sub = {1: 32, 2: 16, 4: 8}.get(elem, 8)  # sublane multiple per dtype packing

    cap = _vmem_capacity_bytes()
    # per grid step: double-buffered input block + one f32 compute temp
    per_row_bytes = C * (2 * elem + 4)
    tb = (cap // 3) // max(per_row_bytes, 1)
    tb = max(sub, min(1024, (tb // sub) * sub))
    tb = min(tb, _round_up(B, sub))
    # TODO(synk): if a single (sub, C) row-block ever exceeds VMEM, add a second
    # grid axis over C with an online logsumexp (running m/s in VMEM scratch,
    # positive logit captured only on the c==0 block).

    B_pad = _round_up(B, tb)
    if B_pad != B:
        # padded rows give finite garbage losses and are sliced off below
        x2d = jnp.pad(x2d, ((0, B_pad - B), (0, 0)))

    grid = (B_pad // tb,)
    kernel = functools.partial(_nce_softmax_ns_kernel, block_b=tb)

    losses = pl.pallas_call(
        kernel,
        out_shape=jax.ShapeDtypeStruct((B_pad, 1), jnp.float32),
        grid_spec=pltpu.PrefetchScalarGridSpec(
            num_scalar_prefetch=0,
            grid=grid,
            in_specs=[pl.BlockSpec((tb, C), lambda i: (i, 0))],
            out_specs=pl.BlockSpec((tb, 1), lambda i: (i, 0)),
        ),
        compiler_params=pltpu.CompilerParams(
            dimension_semantics=("parallel",),  # megacore sharding on v7x
            vmem_limit_bytes=int(min(cap * 3 // 4, 100 * 1024 * 1024)),
        ),
        cost_estimate=pl.CostEstimate(
            flops=3 * B_pad * C,
            transcendentals=B_pad * C,
            bytes_accessed=B_pad * C * elem + B_pad * 4,
        ),
    )(x2d)

    # nn.CrossEntropyLoss default reduction='mean' (tiny: plain-JAX glue)
    return jnp.mean(losses[:B, 0])


def _reference(x):
    x2d = _squeeze_to_logits(x).astype(jnp.float32)
    B = x2d.shape[0]
    logp = jax.nn.log_softmax(x2d, axis=-1)
    return -jnp.mean(logp[jnp.arange(B), jnp.arange(B)])


if __name__ == "__main__":
    key = jax.random.PRNGKey(0)
    bsz = 16
    # NS-variant logits: [bsz, bsz, 1] similarity scores; squeeze -> [bsz, bsz]
    x = jax.random.normal(key, (bsz, bsz, 1), dtype=jnp.float32)

    loss = nce_softmax_loss_ns(x)
    jax.block_until_ready(loss)

    ref = _reference(x)
    assert loss.shape == ()
    assert jnp.allclose(loss, ref, atol=1e-5, rtol=1e-5), (loss, ref)
    print("KERNEL_OK")
</pallas_src>

<mosaic_0001>
module attributes {stable_mosaic.version = 11 : i64} {
  func.func @_nce_softmax_ns_kernel(%arg0: i32, %arg1: memref<16x16xf32, #tpu.memory_space<vmem>>, %arg2: memref<16x1xf32, #tpu.memory_space<vmem>>) attributes {dimension_semantics = [#tpu.dimension_semantics<parallel>], iteration_bounds = array<i64: 1>, scalar_prefetch = 0 : i64, scratch_operands = 0 : i64, tpu.core_type = #tpu.core_type<tc>, window_params = [{transform_indices = @transform_0, window_bounds = array<i64: 16, 16>}, {transform_indices = @transform_1, window_bounds = array<i64: 16, 1>}]} {
    %c0 = arith.constant 0 : index
    %c0_0 = arith.constant 0 : index
    %0 = vector.load %arg1[%c0, %c0_0] : memref<16x16xf32, #tpu.memory_space<vmem>>, vector<16x16xf32>
    %cst = arith.constant dense<0xFF800000> : vector<16xf32>
    %1 = vector.multi_reduction <maximumf>, %0, %cst [1] : vector<16x16xf32> to vector<16xf32>
    %2 = vector.shape_cast %1 : vector<16xf32> to vector<16x1xf32>
    %3 = vector.broadcast %2 : vector<16x1xf32> to vector<16x16xf32>
    %4 = arith.subf %0, %3 : vector<16x16xf32>
    %5 = math.exp %4 : vector<16x16xf32>
    %cst_1 = arith.constant dense<0.000000e+00> : vector<16xf32>
    %6 = vector.multi_reduction <add>, %5, %cst_1 [1] : vector<16x16xf32> to vector<16xf32>
    %7 = vector.shape_cast %6 : vector<16xf32> to vector<16x1xf32>
    %8 = math.log %7 : vector<16x1xf32>
    %9 = arith.addf %8, %2 : vector<16x1xf32>
    %10 = tpu.iota {dimensions = array<i32: 0>} : vector<16x16xi32>
    %c16_i32 = arith.constant 16 : i32
    %11 = arith.muli %arg0, %c16_i32 : i32
    %12 = vector.broadcast %11 : i32 to vector<16x16xi32>
    %13 = arith.addi %10, %12 : vector<16x16xi32>
    %14 = tpu.iota {dimensions = array<i32: 1>} : vector<16x16xi32>
    %15 = arith.cmpi eq, %14, %13 : vector<16x16xi32>
    %cst_2 = arith.constant 0.000000e+00 : f32
    %16 = vector.broadcast %cst_2 : f32 to vector<16x16xf32>
    %17 = arith.select %15, %0, %16 : vector<16x16xi1>, vector<16x16xf32>
    %cst_3 = arith.constant dense<0.000000e+00> : vector<16xf32>
    %18 = vector.multi_reduction <add>, %17, %cst_3 [1] : vector<16x16xf32> to vector<16xf32>
    %19 = vector.shape_cast %18 : vector<16xf32> to vector<16x1xf32>
    %20 = arith.subf %9, %19 : vector<16x1xf32>
    %c0_4 = arith.constant 0 : index
    %c0_5 = arith.constant 0 : index
    %21 = vector.load %arg2[%c0_4, %c0_5] : memref<16x1xf32, #tpu.memory_space<vmem>>, vector<16x1xf32>
    tpu.vector_store %arg2[%c0_4, %c0_5], %20 {strides = array<i32>} : memref<16x1xf32, #tpu.memory_space<vmem>>, vector<16x1xf32>,
    return
  }
  func.func @transform_0(%arg0: i32) -> (i32, i32) {
    %c0_i32 = arith.constant 0 : i32
    %c0_i32_0 = arith.constant 0 : i32
    return %arg0, %c0_i32 : i32, i32
  }
  func.func @transform_1(%arg0: i32) -> (i32, i32) {
    %c0_i32 = arith.constant 0 : i32
    %c0_i32_0 = arith.constant 0 : i32
    return %arg0, %c0_i32 : i32, i32
  }
}

</mosaic_0001>

<bundles_post_ra>
// kernel: tpu_custom_call.1
= control target key start
LH: loop header
LB: loop body
LE: loop exit
PB: predicated region body
PF: predicated region fallthrough
CT: control target
= control target key end

     0   :  { %6 = vsyncpa [#allocation3], 0  ;;  %s117_s9 = smov [#allocation2]   ;;  %s118_s11 = smov 128   ;;  %s145_s0 = inlined_call_operand.hbm [shape: f32[16,16], index: 0, kind: input, shape index: {}]   ;;  %s146_s1 = inlined_call_operand.vmem [shape: f32[16,1], index: 1, kind: output, shape index: {}]  }
   0x1   :  { %s11_s8 = sshll.u32 %s145_s0, 4  ;;  %s13_s10 = sshll.u32 %s117_s9, 4  ;;  %s12_s8 = int_to_ptr.hbm [resolvable:$true] %s11_s8  ;;  %s14_s10 = int_to_ptr.vmem [resolvable:$true] %s13_s10 }
   0x2   :  { %s119_s12 = smov 8  }
   0x3   :  { %19 = dma.hbm_to_vmem [thread:$0]  %s12_s8, 256, %s14_s10, [#allocation3], %s118_s11, %s118_s11, %s119_s12  }
   0x4   :  { %115 = dma.done.wait [#allocation3], 256  }
   0x5   :  { %116 = vsyncadd [#allocation3], 4294967040  ;;  %vm26_vm0 = vcmask 130048   ;;  %v24_v0 = vld [vmem:[#allocation2] sm:$0xff]  ;;  %v25_v2 = vld [vmem:[#allocation2 + $0x8] sm:$0xff]  ;;  %v51_v4 = vlaneseq  ;;  %vm72_vm3 = vcmask 7168  }
   0x6   :  { %v27_v1 = vsel %vm26_vm0, %v24_v0, -inf  ;;  %v30_v3 = vsel %vm26_vm0, %v25_v2, -inf }
   0x7   :  { %28 = vmax.xlane.f32.xlu0 %v27_v1  ;;  %v52_v5 = vshrl.u32 %v51_v4, 7  ;;  %v59_v6 = vand.u32 127, %v51_v4 }
   0x9   :  { %vm60_vm1 = vcmp.eq.s32.totalorder %v59_v6, %v52_v5  ;;  %v53_v7 = vadd.s32 8, %v52_v5 }
   0xa   :  { %v62_v8 = vsel %vm60_vm1, %v24_v0, 0.0 }
   0xb   :  { %v64_v9 = vsel %vm26_vm0, %v62_v8, 0.0  ;;  %vm61_vm2 = vcmp.eq.s32.totalorder %v59_v6, %v53_v7 }
   0xc   :  { %65 = vadd.xlane.f32.xlu2 %v64_v9  ;;  %v63_v10 = vsel %vm61_vm2, %v25_v2, 0.0 }
   0xd   :  { %v67_v11 = vsel %vm26_vm0, %v63_v10, 0.0 }
   0xf   :  { %31 = vmax.xlane.f32.xlu0 %v30_v3 }
  0x14   :  { %68 = vadd.xlane.f32.xlu2 %v67_v11 }
  0x7a   :  { %v29_v12 = vpop.xlane.xlu0 %28 }
  0x7b   :  { %v33_v13 = vsub.f32 %v24_v0, %v29_v12 }
  0x7d   :  { %v35_v14 = vmul.f32 1.442695, %v33_v13 }
  0x7f   :  { %83 = vpow2.f32 %v35_v14  ;;  %v66_v24 = vpop.xlane.xlu2 %65 }
  0x82   :  { %v32_v15 = vpop.xlane.xlu0 %31 }
  0x83   :  { %v34_v16 = vsub.f32 %v25_v2, %v32_v15 }
  0x85   :  { %v84_v17 = vpop.eup %83  ;;  %v37_v18 = vmul.f32 1.442695, %v34_v16 }
  0x86   :  { %v39_v19 = vsel %vm26_vm0, %v84_v17, 0.0 }
  0x87   :  { %85 = vpow2.f32 %v37_v18  ;;  %40 = vadd.xlane.f32.xlu1 %v39_v19  ;;  %v69_v31 = vpop.xlane.xlu2 %68 }
  0x8d   :  { %v86_v20 = vpop.eup %85 }
  0x8e   :  { %v42_v21 = vsel %vm26_vm0, %v86_v20, 0.0 }
  0x8f   :  { %43 = vadd.xlane.f32.xlu1 %v42_v21 }
  0xfa   :  { %v41_v22 = vpop.xlane.xlu1 %40 }
  0xfb   :  { %87 = vlog2.f32 %v41_v22 }
 0x101   :  { %v88_v23 = vpop.eup %87 }
 0x102   :  { %v46_v25 = vmul.f32 0.6931472, %v88_v23  ;;  %v44_v26 = vpop.xlane.xlu1 %43 }
 0x103   :  { %89 = vlog2.f32 %v44_v26 }
 0x104   :  { %v49_v27 = vadd.f32 %v46_v25, %v29_v12 }
 0x106   :  { %v70_v28 = vsub.f32 %v49_v27, %v66_v24 }
 0x108   :  { %73 = vst.msk [vmem:[%s146_s1] sm:$0xff] %vm72_vm3, %v70_v28 }
 0x109   :  { %v90_v29 = vpop.eup %89 }
 0x10a   :  { %v48_v30 = vmul.f32 0.6931472, %v90_v29 }
 0x10c   :  { %v50_v32 = vadd.f32 %v48_v30, %v32_v15 }
 0x10e   :  { %v71_v33 = vsub.f32 %v50_v32, %v69_v31 }
 0x110   :  { %74 = vst.msk [vmem:[%s146_s1 + $0x8] sm:$0xff] %vm72_vm3, %v71_v33 }
 0x111   :  { %79 = vsyncpa [#allocation3], 1 }

</bundles_post_ra>
